<compile_context>
chip_gen: v5e
topology: v5e:2x2
jax: 0.10.0
libtpu: 0.0.40
codegen_flags: <defaults>
</compile_context>

<pallas_src>
import functools

import numpy as np
import jax
import jax.numpy as jnp
from jax.experimental import pallas as pl
from jax.experimental.pallas import tpu as pltpu


def _round_up(x, m):
    return ((x + m - 1) // m) * m


def _pick_tile_m(M):
    """Rows (per example) handled per grid step."""
    m8 = _round_up(M, 8)
    if m8 <= 256:
        return m8  # single grid step; the padded M is the full lane-dense block
    # >=2 lane-aligned (128-multiple) tiles so v7x's two TensorCores both get row
    # tiles; cap at 512 rows/step (big tiles amortize the ~0.35us per-step overhead
    # on v5e/v6e).
    half = _round_up(pl.cdiv(_round_up(M, 128), 2), 128)
    return min(512, half)


def _vmem_limit_bytes(B, tile_m, n_out, n_in, H):
    """Derive the scoped-VMEM limit from actual block sizes (not a blanket number)."""
    f32 = 4
    streamed = (B * tile_m * n_out + B * tile_m) * f32            # c block + out block
    resident = (H * n_in + n_out * H + 3 * B * H + n_out) * f32   # W1, W2, d/izl/lin, b2
    interm = B * tile_m * (2 * H + n_in + n_out) * f32            # nu2, term_h, nu_hat1, c*b2
    need = 2 * streamed + 2 * resident + interm                   # 2x: double-buffered pipeline
    # >=8 MiB floor, <=40 MiB cap (headroom under v7x's 64 MiB physical VMEM).
    return int(min(max(2 * need, 8 * 1024 * 1024), 40 * 1024 * 1024))


def dual_objective_kernel(c_ref, w1_ref, w2_ref, dneg_ref, izl_ref, lin_ref, b2_ref,
                          out_ref, *, epsilon):
    """One M-tile of dual objectives for all B examples.

    c_ref    : (B, TM, n_out) f32  streamed per grid step
    w1_ref   : (H, n_in)      f32  resident (constant index_map)
    w2_ref   : (n_out, H)     f32  resident
    dneg_ref : (B, 1, H)      f32  -d            (resident)
    izl_ref  : (B, 1, H)      f32  I * zl        (resident)
    lin_ref  : (B, 1, H)      f32  b1 + W1 x     (resident; folds -nu_hat1.x - nu2.b1)
    b2_ref   : (1, n_out)     f32  resident
    out_ref  : (B, TM)        f32  lane-dense objectives
    """
    w1 = w1_ref[...]
    w2 = w2_ref[...]
    b2 = b2_ref[...]
    B = c_ref.shape[0]
    for b in range(B):  # static unroll; per-example vectors stay VMEM-resident
        cb = c_ref[b]                                                        # (TM, n_out)
        # nu2 = d * (-c @ W2); the negation is folded into d_neg at construction time.
        nu2 = dneg_ref[b] * jnp.dot(cb, w2, preferred_element_type=jnp.float32)   # (TM, H)
        # nu_hat1 only feeds the eps*||.||_1 term: -nu_hat1.x is folded into lin.
        nu_hat1 = jnp.dot(nu2, w1, preferred_element_type=jnp.float32)            # (TM, n_in)
        term_h = izl_ref[b] * jnp.maximum(nu2, 0.0) - nu2 * lin_ref[b]            # (TM, H)
        obj = (jnp.sum(term_h, axis=-1)
               - epsilon * jnp.sum(jnp.abs(nu_hat1), axis=-1)
               + jnp.sum(cb * b2, axis=-1))                                       # (TM,)
        out_ref[b, :] = obj


def build_dual_network(X, W1, b1, epsilon):
    """Construction-time glue (mirrors DualNetwork.__init__ for the MLP / l-inf case)."""
    # ReLU pre-activation bounds from InfBall + DualLinear1.bounds():
    #   zl/zu = (X W1^T + b1) -/+ eps * ||W1_j||_1
    l1 = jnp.sum(jnp.abs(W1), axis=1)                       # (H,)
    pre = X @ W1.T + b1                                      # (B, H)
    zl = pre - epsilon * l1
    zu = pre + epsilon * l1
    I = jnp.logical_and(zl < 0.0, zu > 0.0)
    denom = jnp.where(I, zu - zl, 1.0)
    d = jnp.where(zl >= 0.0, 1.0, jnp.where(I, zu / denom, 0.0)).astype(jnp.float32)
    return pre, zl, zu, I, d


def dual_network_forward(c, X, W1, b1, W2, b2, epsilon, tile_m=None):
    B, M, n_out = c.shape
    H, n_in = W1.shape

    # Construction-time bounds / slopes (DualNetwork.__init__).
    pre, zl, zu, I, d = build_dual_network(X, W1, b1, epsilon)
    d_neg = (-d).reshape(B, 1, H)                 # sign of nu_hat2 = -c@W2 folded in
    izl = jnp.where(I, zl, 0.0).reshape(B, 1, H)  # fused I * zl
    lin = pre.reshape(B, 1, H)                    # b1 + W1 x (folds -nu_hat1.x - nu2.b1)

    if tile_m is None:
        tile_m = _pick_tile_m(M)
    Mp = _round_up(M, tile_m)
    num_tiles = Mp // tile_m
    pad = Mp - M
    # Only c is padded (zero rows -> nu2 = 0 -> objective exactly 0, sliced off below).
    c_p = jnp.pad(c, ((0, 0), (0, pad), (0, 0))) if pad else c

    kernel = functools.partial(dual_objective_kernel, epsilon=float(epsilon))
    out = pl.pallas_call(
        kernel,
        out_shape=jax.ShapeDtypeStruct((B, Mp), jnp.float32),
        grid=(num_tiles,),
        in_specs=[
            pl.BlockSpec((B, tile_m, n_out), lambda mt: (0, mt, 0)),  # c (streamed)
            pl.BlockSpec((H, n_in),          lambda mt: (0, 0)),      # W1 (resident)
            pl.BlockSpec((n_out, H),         lambda mt: (0, 0)),      # W2 (resident)
            pl.BlockSpec((B, 1, H),          lambda mt: (0, 0, 0)),   # -d
            pl.BlockSpec((B, 1, H),          lambda mt: (0, 0, 0)),   # I * zl
            pl.BlockSpec((B, 1, H),          lambda mt: (0, 0, 0)),   # b1 + W1 x
            pl.BlockSpec((1, n_out),         lambda mt: (0, 0)),      # b2
        ],
        out_specs=pl.BlockSpec((B, tile_m), lambda mt: (0, mt)),      # lane-dense rows
        compiler_params=pltpu.CompilerParams(
            dimension_semantics=("parallel",),   # disjoint M-tiles -> megacore-shardable
            vmem_limit_bytes=_vmem_limit_bytes(B, tile_m, n_out, n_in, H),
        ),
    )(c_p, W1, W2, d_neg, izl, lin, b2.reshape(1, n_out))

    return out[:, :M]                              # (B, M)


def dual_network_forward_ref(c, X, W1, b1, W2, b2, epsilon):
    """Pure-JAX f32 reference mirroring DualNetwork.forward for the MLP case."""
    hp = jax.lax.Precision.HIGHEST
    pre, zl, zu, I, d = build_dual_network(X, W1, b1, epsilon)
    izl = jnp.where(I, zl, 0.0)

    nu_hat2 = -jnp.einsum('bmo,oh->bmh', c, W2, precision=hp)
    nu2 = d[:, None, :] * nu_hat2
    nu_hat1 = jnp.einsum('bmh,hn->bmn', nu2, W1, precision=hp)

    o_input = (-jnp.einsum('bmn,bn->bm', nu_hat1, X, precision=hp)
               - epsilon * jnp.sum(jnp.abs(nu_hat1), axis=-1))
    o_hidden = jnp.sum(izl[:, None, :] * jnp.maximum(nu2, 0.0)
                       - nu2 * b1[None, None, :], axis=-1)
    o_last = jnp.einsum('bmo,o->bm', c, b2, precision=hp)
    return o_input + o_hidden + o_last


if __name__ == "__main__":
    B, n_in, H, n_out, M = 2, 32, 64, 8, 8
    epsilon = 0.1

    key = jax.random.PRNGKey(0)
    kx, kc, k1, k2, k3, k4 = jax.random.split(key, 6)
    X = jax.random.normal(kx, (B, n_in), dtype=jnp.float32)
    c = jax.random.normal(kc, (B, M, n_out), dtype=jnp.float32)
    W1 = 0.3 * jax.random.normal(k1, (H, n_in), dtype=jnp.float32)
    b1 = 0.1 * jax.random.normal(k2, (H,), dtype=jnp.float32)
    W2 = 0.3 * jax.random.normal(k3, (n_out, H), dtype=jnp.float32)
    b2 = 0.1 * jax.random.normal(k4, (n_out,), dtype=jnp.float32)

    out = dual_network_forward(c, X, W1, b1, W2, b2, epsilon)
    out = jax.block_until_ready(out)

    ref = dual_network_forward_ref(c, X, W1, b1, W2, b2, epsilon)
    np.testing.assert_allclose(np.asarray(out), np.asarray(ref), rtol=2e-3, atol=2e-3)

    print("KERNEL_OK")
</pallas_src>

<mosaic_0001>
module attributes {stable_mosaic.version = 11 : i64} {
  func.func @dual_objective_kernel(%arg0: i32, %arg1: memref<2x8x8xf32, #tpu.memory_space<vmem>>, %arg2: memref<64x32xf32, #tpu.memory_space<vmem>>, %arg3: memref<8x64xf32, #tpu.memory_space<vmem>>, %arg4: memref<2x1x64xf32, #tpu.memory_space<vmem>>, %arg5: memref<2x1x64xf32, #tpu.memory_space<vmem>>, %arg6: memref<2x1x64xf32, #tpu.memory_space<vmem>>, %arg7: memref<1x8xf32, #tpu.memory_space<vmem>>, %arg8: memref<2x8xf32, #tpu.memory_space<vmem>>) attributes {dimension_semantics = [#tpu.dimension_semantics<parallel>], iteration_bounds = array<i64: 1>, scalar_prefetch = 0 : i64, scratch_operands = 0 : i64, tpu.core_type = #tpu.core_type<tc>, window_params = [{transform_indices = @transform_0, window_bounds = array<i64: 2, 8, 8>}, {pipeline_mode = #tpu.pipeline_mode<synchronous>, transform_indices = @transform_1, window_bounds = array<i64: 64, 32>}, {pipeline_mode = #tpu.pipeline_mode<synchronous>, transform_indices = @transform_2, window_bounds = array<i64: 8, 64>}, {pipeline_mode = #tpu.pipeline_mode<synchronous>, transform_indices = @transform_3, window_bounds = array<i64: 2, 1, 64>}, {pipeline_mode = #tpu.pipeline_mode<synchronous>, transform_indices = @transform_4, window_bounds = array<i64: 2, 1, 64>}, {pipeline_mode = #tpu.pipeline_mode<synchronous>, transform_indices = @transform_5, window_bounds = array<i64: 2, 1, 64>}, {pipeline_mode = #tpu.pipeline_mode<synchronous>, transform_indices = @transform_6, window_bounds = array<i64: 1, 8>}, {transform_indices = @transform_7, window_bounds = array<i64: 2, 8>}]} {
    %c0 = arith.constant 0 : index
    %c0_0 = arith.constant 0 : index
    %0 = vector.load %arg2[%c0, %c0_0] : memref<64x32xf32, #tpu.memory_space<vmem>>, vector<64x32xf32>
    %c0_1 = arith.constant 0 : index
    %c0_2 = arith.constant 0 : index
    %1 = vector.load %arg3[%c0_1, %c0_2] : memref<8x64xf32, #tpu.memory_space<vmem>>, vector<8x64xf32>
    %c0_3 = arith.constant 0 : index
    %c0_4 = arith.constant 0 : index
    %2 = vector.load %arg7[%c0_3, %c0_4] : memref<1x8xf32, #tpu.memory_space<vmem>>, vector<1x8xf32>
    %c0_5 = arith.constant 0 : index
    %c0_6 = arith.constant 0 : index
    %c0_7 = arith.constant 0 : index
    %3 = vector.load %arg1[%c0_5, %c0_6, %c0_7] : memref<2x8x8xf32, #tpu.memory_space<vmem>>, vector<1x8x8xf32>
    %4 = vector.shape_cast %3 : vector<1x8x8xf32> to vector<8x8xf32>
    %c0_8 = arith.constant 0 : index
    %c0_9 = arith.constant 0 : index
    %c0_10 = arith.constant 0 : index
    %5 = vector.load %arg4[%c0_8, %c0_9, %c0_10] : memref<2x1x64xf32, #tpu.memory_space<vmem>>, vector<1x1x64xf32>
    %6 = vector.shape_cast %5 : vector<1x1x64xf32> to vector<1x64xf32>
    %cst = arith.constant dense<0.000000e+00> : vector<8x64xf32>
    %7 = tpu.matmul %4, %1, %cst {dimension_numbers = #tpu.dot_dimension_numbers<[1], [0], [0], [1], [0, 0, 1, 1], [], []>} : vector<8x8xf32>, vector<8x64xf32>, vector<8x64xf32> -> vector<8x64xf32>
    %8 = vector.broadcast %6 : vector<1x64xf32> to vector<8x64xf32>
    %9 = arith.mulf %8, %7 : vector<8x64xf32>
    %cst_11 = arith.constant dense<0.000000e+00> : vector<8x32xf32>
    %10 = tpu.matmul %9, %0, %cst_11 {dimension_numbers = #tpu.dot_dimension_numbers<[1], [0], [0], [1], [0, 0, 1, 1], [], []>} : vector<8x64xf32>, vector<64x32xf32>, vector<8x32xf32> -> vector<8x32xf32>
    %c0_12 = arith.constant 0 : index
    %c0_13 = arith.constant 0 : index
    %c0_14 = arith.constant 0 : index
    %11 = vector.load %arg5[%c0_12, %c0_13, %c0_14] : memref<2x1x64xf32, #tpu.memory_space<vmem>>, vector<1x1x64xf32>
    %12 = vector.shape_cast %11 : vector<1x1x64xf32> to vector<1x64xf32>
    %cst_15 = arith.constant 0.000000e+00 : f32
    %13 = vector.broadcast %cst_15 : f32 to vector<8x64xf32>
    %14 = arith.maximumf %9, %13 : vector<8x64xf32>
    %15 = vector.broadcast %12 : vector<1x64xf32> to vector<8x64xf32>
    %16 = arith.mulf %15, %14 : vector<8x64xf32>
    %c0_16 = arith.constant 0 : index
    %c0_17 = arith.constant 0 : index
    %c0_18 = arith.constant 0 : index
    %17 = vector.load %arg6[%c0_16, %c0_17, %c0_18] : memref<2x1x64xf32, #tpu.memory_space<vmem>>, vector<1x1x64xf32>
    %18 = vector.shape_cast %17 : vector<1x1x64xf32> to vector<1x64xf32>
    %19 = vector.broadcast %18 : vector<1x64xf32> to vector<8x64xf32>
    %20 = arith.mulf %9, %19 : vector<8x64xf32>
    %21 = arith.subf %16, %20 : vector<8x64xf32>
    %cst_19 = arith.constant dense<0.000000e+00> : vector<8xf32>
    %22 = vector.multi_reduction <add>, %21, %cst_19 [1] : vector<8x64xf32> to vector<8xf32>
    %23 = math.absf %10 : vector<8x32xf32>
    %cst_20 = arith.constant dense<0.000000e+00> : vector<8xf32>
    %24 = vector.multi_reduction <add>, %23, %cst_20 [1] : vector<8x32xf32> to vector<8xf32>
    %cst_21 = arith.constant 1.000000e-01 : f32
    %25 = vector.broadcast %cst_21 : f32 to vector<8xf32>
    %26 = arith.mulf %25, %24 : vector<8xf32>
    %27 = arith.subf %22, %26 : vector<8xf32>
    %28 = vector.broadcast %2 : vector<1x8xf32> to vector<8x8xf32>
    %29 = arith.mulf %4, %28 : vector<8x8xf32>
    %cst_22 = arith.constant dense<0.000000e+00> : vector<8xf32>
    %30 = vector.multi_reduction <add>, %29, %cst_22 [1] : vector<8x8xf32> to vector<8xf32>
    %31 = arith.addf %27, %30 : vector<8xf32>
    %c0_23 = arith.constant 0 : index
    %c0_24 = arith.constant 0 : index
    %32 = vector.load %arg8[%c0_23, %c0_24] : memref<2x8xf32, #tpu.memory_space<vmem>>, vector<1x8xf32>
    %33 = vector.shape_cast %32 : vector<1x8xf32> to vector<8xf32>
    %34 = vector.shape_cast %31 : vector<8xf32> to vector<1x8xf32>
    tpu.vector_store %arg8[%c0_23, %c0_24], %34 {strides = array<i32>} : memref<2x8xf32, #tpu.memory_space<vmem>>, vector<1x8xf32>,
    %c1 = arith.constant 1 : index
    %c0_25 = arith.constant 0 : index
    %c0_26 = arith.constant 0 : index
    %35 = vector.load %arg1[%c1, %c0_25, %c0_26] : memref<2x8x8xf32, #tpu.memory_space<vmem>>, vector<1x8x8xf32>
    %36 = vector.shape_cast %35 : vector<1x8x8xf32> to vector<8x8xf32>
    %c1_27 = arith.constant 1 : index
    %c0_28 = arith.constant 0 : index
    %c0_29 = arith.constant 0 : index
    %37 = vector.load %arg4[%c1_27, %c0_28, %c0_29] : memref<2x1x64xf32, #tpu.memory_space<vmem>>, vector<1x1x64xf32>
    %38 = vector.shape_cast %37 : vector<1x1x64xf32> to vector<1x64xf32>
    %cst_30 = arith.constant dense<0.000000e+00> : vector<8x64xf32>
    %39 = tpu.matmul %36, %1, %cst_30 {dimension_numbers = #tpu.dot_dimension_numbers<[1], [0], [0], [1], [0, 0, 1, 1], [], []>} : vector<8x8xf32>, vector<8x64xf32>, vector<8x64xf32> -> vector<8x64xf32>
    %40 = vector.broadcast %38 : vector<1x64xf32> to vector<8x64xf32>
    %41 = arith.mulf %40, %39 : vector<8x64xf32>
    %cst_31 = arith.constant dense<0.000000e+00> : vector<8x32xf32>
    %42 = tpu.matmul %41, %0, %cst_31 {dimension_numbers = #tpu.dot_dimension_numbers<[1], [0], [0], [1], [0, 0, 1, 1], [], []>} : vector<8x64xf32>, vector<64x32xf32>, vector<8x32xf32> -> vector<8x32xf32>
    %c1_32 = arith.constant 1 : index
    %c0_33 = arith.constant 0 : index
    %c0_34 = arith.constant 0 : index
    %43 = vector.load %arg5[%c1_32, %c0_33, %c0_34] : memref<2x1x64xf32, #tpu.memory_space<vmem>>, vector<1x1x64xf32>
    %44 = vector.shape_cast %43 : vector<1x1x64xf32> to vector<1x64xf32>
    %cst_35 = arith.constant 0.000000e+00 : f32
    %45 = vector.broadcast %cst_35 : f32 to vector<8x64xf32>
    %46 = arith.maximumf %41, %45 : vector<8x64xf32>
    %47 = vector.broadcast %44 : vector<1x64xf32> to vector<8x64xf32>
    %48 = arith.mulf %47, %46 : vector<8x64xf32>
    %c1_36 = arith.constant 1 : index
    %c0_37 = arith.constant 0 : index
    %c0_38 = arith.constant 0 : index
    %49 = vector.load %arg6[%c1_36, %c0_37, %c0_38] : memref<2x1x64xf32, #tpu.memory_space<vmem>>, vector<1x1x64xf32>
    %50 = vector.shape_cast %49 : vector<1x1x64xf32> to vector<1x64xf32>
    %51 = vector.broadcast %50 : vector<1x64xf32> to vector<8x64xf32>
    %52 = arith.mulf %41, %51 : vector<8x64xf32>
    %53 = arith.subf %48, %52 : vector<8x64xf32>
    %cst_39 = arith.constant dense<0.000000e+00> : vector<8xf32>
    %54 = vector.multi_reduction <add>, %53, %cst_39 [1] : vector<8x64xf32> to vector<8xf32>
    %55 = math.absf %42 : vector<8x32xf32>
    %cst_40 = arith.constant dense<0.000000e+00> : vector<8xf32>
    %56 = vector.multi_reduction <add>, %55, %cst_40 [1] : vector<8x32xf32> to vector<8xf32>
    %cst_41 = arith.constant 1.000000e-01 : f32
    %57 = vector.broadcast %cst_41 : f32 to vector<8xf32>
    %58 = arith.mulf %57, %56 : vector<8xf32>
    %59 = arith.subf %54, %58 : vector<8xf32>
    %60 = vector.broadcast %2 : vector<1x8xf32> to vector<8x8xf32>
    %61 = arith.mulf %36, %60 : vector<8x8xf32>
    %cst_42 = arith.constant dense<0.000000e+00> : vector<8xf32>
    %62 = vector.multi_reduction <add>, %61, %cst_42 [1] : vector<8x8xf32> to vector<8xf32>
    %63 = arith.addf %59, %62 : vector<8xf32>
    %c1_43 = arith.constant 1 : index
    %c0_44 = arith.constant 0 : index
    %64 = vector.load %arg8[%c1_43, %c0_44] : memref<2x8xf32, #tpu.memory_space<vmem>>, vector<1x8xf32>
    %65 = vector.shape_cast %64 : vector<1x8xf32> to vector<8xf32>
    %66 = vector.shape_cast %63 : vector<8xf32> to vector<1x8xf32>
    tpu.vector_store %arg8[%c1_43, %c0_44], %66 {strides = array<i32>} : memref<2x8xf32, #tpu.memory_space<vmem>>, vector<1x8xf32>,
    return
  }
  func.func @transform_0(%arg0: i32) -> (i32, i32, i32) {
    %c0_i32 = arith.constant 0 : i32
    %c0_i32_0 = arith.constant 0 : i32
    %c0_i32_1 = arith.constant 0 : i32
    return %c0_i32, %arg0, %c0_i32_0 : i32, i32, i32
  }
  func.func @transform_1(%arg0: i32) -> (i32, i32) {
    %c0_i32 = arith.constant 0 : i32
    %c0_i32_0 = arith.constant 0 : i32
    %c0_i32_1 = arith.constant 0 : i32
    return %c0_i32, %c0_i32_0 : i32, i32
  }
  func.func @transform_2(%arg0: i32) -> (i32, i32) {
    %c0_i32 = arith.constant 0 : i32
    %c0_i32_0 = arith.constant 0 : i32
    %c0_i32_1 = arith.constant 0 : i32
    return %c0_i32, %c0_i32_0 : i32, i32
  }
  func.func @transform_3(%arg0: i32) -> (i32, i32, i32) {
    %c0_i32 = arith.constant 0 : i32
    %c0_i32_0 = arith.constant 0 : i32
    %c0_i32_1 = arith.constant 0 : i32
    %c0_i32_2 = arith.constant 0 : i32
    return %c0_i32, %c0_i32_0, %c0_i32_1 : i32, i32, i32
  }
  func.func @transform_4(%arg0: i32) -> (i32, i32, i32) {
    %c0_i32 = arith.constant 0 : i32
    %c0_i32_0 = arith.constant 0 : i32
    %c0_i32_1 = arith.constant 0 : i32
    %c0_i32_2 = arith.constant 0 : i32
    return %c0_i32, %c0_i32_0, %c0_i32_1 : i32, i32, i32
  }
  func.func @transform_5(%arg0: i32) -> (i32, i32, i32) {
    %c0_i32 = arith.constant 0 : i32
    %c0_i32_0 = arith.constant 0 : i32
    %c0_i32_1 = arith.constant 0 : i32
    %c0_i32_2 = arith.constant 0 : i32
    return %c0_i32, %c0_i32_0, %c0_i32_1 : i32, i32, i32
  }
  func.func @transform_6(%arg0: i32) -> (i32, i32) {
    %c0_i32 = arith.constant 0 : i32
    %c0_i32_0 = arith.constant 0 : i32
    %c0_i32_1 = arith.constant 0 : i32
    return %c0_i32, %c0_i32_0 : i32, i32
  }
  func.func @transform_7(%arg0: i32) -> (i32, i32) {
    %c0_i32 = arith.constant 0 : i32
    %c0_i32_0 = arith.constant 0 : i32
    return %c0_i32, %arg0 : i32, i32
  }
}

</mosaic_0001>

<bundles_post_ra>
// kernel: tpu_custom_call.1
= control target key start
LH: loop header
LB: loop body
LE: loop exit
PB: predicated region body
PF: predicated region fallthrough
CT: control target
= control target key end

     0   :  { %vm39_vm0 = vcmask 64512   ;;  %s378_s0 = inlined_call_operand.vmem [shape: f32[2,8,8], index: 0, kind: input, shape index: {}]   ;;  %s379_s1 = inlined_call_operand.vmem [shape: f32[64,32], index: 1, kind: input, shape index: {}]   ;;  %s380_s2 = inlined_call_operand.vmem [shape: f32[8,64], index: 2, kind: input, shape index: {}]   ;;  %s381_s3 = inlined_call_operand.vmem [shape: f32[2,1,64], index: 3, kind: input, shape index: {}]   ;;  %s382_s4 = inlined_call_operand.vmem [shape: f32[2,1,64], index: 4, kind: input, shape index: {}]   ;;  %s383_s5 = inlined_call_operand.vmem [shape: f32[2,1,64], index: 5, kind: input, shape index: {}]   ;;  %s384_s6 = inlined_call_operand.vmem [shape: f32[1,8], index: 6, kind: input, shape index: {}]   ;;  %s385_s7 = inlined_call_operand.hbm [shape: f32[2,8], index: 7, kind: output, shape index: {}]  }
   0x1   :  { %v35_v0 = vld [vmem:[%s380_s2] sm:$0xff]  ;;  %v232_v2 = vld [vmem:[%s378_s0 + $0x8] sm:$0xff]  ;;  %v34_v3 = vld [vmem:[%s379_s1 + $0x38] sm:$0xff] }
   0x2   :  { %v37_v1 = vld [vmem:[%s378_s0] sm:$0xff]  ;;  %58 = vmatpush.msra.mxu0 %v35_v0  ;;  %150 = vmatpush.msra.mxu2 %v35_v0  ;;  %v33_v4 = vld [vmem:[%s379_s1 + $0x30] sm:$0xff]  ;;  %v32_v5 = vld [vmem:[%s379_s1 + $0x28] sm:$0xff] }
   0x3   :  { %230 = vmatmul.msk.f32.vlgmr.msra.gmra.mxu0 %vm39_vm0, %v37_v1  ;;  %234 = vmatmul.msk.f32.vlgmr.msra.gmra.mxu2 %vm39_vm0, %v232_v2 }
   0x4   :  { %79 = vmatpush.msra.mxu1 %v34_v3  ;;  %170 = vmatpush.msra.mxu3 %v34_v3 }
   0x6   :  { %80 = vmatpush.msra.mxu1 %v33_v4  ;;  %171 = vmatpush.msra.mxu3 %v33_v4 }
   0x7   :  { %12 = vsyncpa [#allocation3], 0  ;;  %v31_v6 = vld [vmem:[%s379_s1 + $0x20] sm:$0xff]  ;;  %v30_v7 = vld [vmem:[%s379_s1 + $0x18] sm:$0xff]  ;;  %vm67_vm1 = vcmask 523264   ;;  %vm107_vm2 = vcmask 261120   ;;  %v122_v42 = vlaneseq }
   0x8   :  { %81 = vmatpush.msra.mxu1 %v32_v5  ;;  %172 = vmatpush.msra.mxu3 %v32_v5  ;;  %v29_v8 = vld [vmem:[%s379_s1 + $0x10] sm:$0xff]  ;;  %v28_v9 = vld [vmem:[%s379_s1 + $0x8] sm:$0xff]  ;;  %v27_v10 = vld [vmem:[%s379_s1] sm:$0xff]  ;;  %vm126_vm3 = vcmask 57344   ;;  %s221_s10 = sshll.u32 %s385_s7, 4  ;;  %s222_s10 = int_to_ptr.hbm [resolvable:$true] %s221_s10 }
   0x9   :  { %v239_v11 = vld [vmem:[%s381_s3] ss:$0 sm:$0xff]  ;;  %v240_v17 = vld [vmem:[%s381_s3 + $0x1] ss:$0 sm:$0xff]  ;;  %v123_v47 = vand.u32 127, %v122_v42 }
   0xa   :  { %82 = vmatpush.msra.mxu1 %v31_v6  ;;  %173 = vmatpush.msra.mxu3 %v31_v6  ;;  %v242_v12 = vld [vmem:[%s383_s5] ss:$0 sm:$0xff]  ;;  %v243_v23 = vld [vmem:[%s382_s4 + $0x1] ss:$0 sm:$0xff] }
   0xb   :  { %v241_v15 = vld [vmem:[%s382_s4] ss:$0 sm:$0xff]  ;;  %v244_v24 = vld [vmem:[%s383_s5 + $0x1] ss:$0 sm:$0xff]  ;;  %s272_s4 = smov [#allocation2]  }
   0xc   :  { %83 = vmatpush.msra.mxu1 %v30_v7  ;;  %174 = vmatpush.msra.mxu3 %v30_v7  ;;  %v245_v31 = vld [vmem:[%s384_s6] ss:$0 sm:$0xff]  ;;  %s219_s5 = sshll.u32 %s272_s4, 4  ;;  %s220_s5 = int_to_ptr.vmem [resolvable:$true] %s219_s5 }
   0xd   :  { %v116_v32 = vmul.f32 %v245_v31, %v37_v1  ;;  %v205_v34 = vmul.f32 %v245_v31, %v232_v2 }
   0xe   :  { %84 = vmatpush.msra.mxu1 %v29_v8  ;;  %175 = vmatpush.msra.mxu3 %v29_v8 }
   0xf   :  { %v117_v33 = vsel %vm39_vm0, %v116_v32, 0.0  ;;  %v206_v35 = vsel %vm39_vm0, %v205_v34, 0.0 }
  0x10   :  { %85 = vmatpush.msra.mxu1 %v28_v9  ;;  %176 = vmatpush.msra.mxu3 %v28_v9 }
  0x11   :  { %118 = vadd.xlane.f32.xlu2 %v117_v33 }
  0x12   :  { %86 = vmatpush.msra.mxu1 %v27_v10  ;;  %177 = vmatpush.msra.mxu3 %v27_v10 }
  0x19   :  { %207 = vadd.xlane.f32.xlu2 %v206_v35 }
  0x80   :  { %v60_v13 = vpop.f32.mrf.mxu0 }
  0x81   :  { %v66_v14 = vmul.f32 %v239_v11, %v60_v13 }
  0x83   :  { %v92_v16 = vmax.f32 %v66_v14, 0.0  ;;  %231 = vmatmul.msk.f32.vlgmr.msra.gmra.mxu1 %vm67_vm1, %v66_v14  ;;  %v101_v18 = vmul.f32 %v242_v12, %v66_v14 }
  0x84   :  { %v119_v46 = vpop.xlane.xlu2 %118 }
  0x85   :  { %v96_v19 = vmul.f32 %v241_v15, %v92_v16 }
  0x86   :  { %v152_v20 = vpop.f32.mrf.mxu2 }
  0x87   :  { %v158_v21 = vmul.f32 %v240_v17, %v152_v20  ;;  %v102_v22 = vsub.f32 %v96_v19, %v101_v18 }
  0x89   :  { %v184_v25 = vmax.f32 %v158_v21, 0.0  ;;  %235 = vmatmul.msk.f32.vlgmr.msra.gmra.mxu3 %vm67_vm1, %v158_v21  ;;  %v103_v26 = vsel %vm67_vm1, %v102_v22, 0.0  ;;  %v194_v28 = vmul.f32 %v244_v24, %v158_v21 }
  0x8a   :  { %104 = vadd.xlane.f32.xlu1 %v103_v26 }
  0x8b   :  { %v188_v27 = vmul.f32 %v243_v23, %v184_v25 }
  0x8c   :  { %v208_v54 = vpop.xlane.xlu2 %207 }
  0x8d   :  { %v195_v29 = vsub.f32 %v188_v27, %v194_v28 }
  0x8f   :  { %v196_v30 = vsel %vm67_vm1, %v195_v29, 0.0 }
  0x92   :  { %197 = vadd.xlane.f32.xlu1 %v196_v30 }
  0xfd   :  { %v105_v45 = vpop.xlane.xlu1 %104 }
 0x100   :  { %v88_v36 = vpop.f32.mrf.mxu1 }
 0x101   :  { %v106_v37 = vand.u32 2147483647, %v88_v36 }
 0x103   :  { %v108_v38 = vsel %vm107_vm2, %v106_v37, 0.0 }
 0x104   :  { %109 = vadd.xlane.f32.xlu0 %v108_v38 }
 0x105   :  { %v198_v53 = vpop.xlane.xlu1 %197 }
 0x10c   :  { %v179_v39 = vpop.f32.mrf.mxu3 }
 0x10d   :  { %v199_v40 = vand.u32 2147483647, %v179_v39 }
 0x10f   :  { %v200_v41 = vsel %vm107_vm2, %v199_v40, 0.0 }
 0x110   :  { %201 = vadd.xlane.f32.xlu0 %v200_v41 }
 0x177   :  { %v110_v43 = vpop.xlane.xlu0 %109 }
 0x178   :  { %v111_v44 = vmul.f32 0.1, %v110_v43 }
 0x17a   :  { %v112_v48 = vsub.f32 %v105_v45, %v111_v44 }
 0x17c   :  { %v120_v49 = vadd.f32 %v119_v46, %v112_v48 }
 0x17e   :  { %v124_v50 = vperm.slane %v120_v49, %v123_v47 }
 0x180   :  { %127 = vst.msk [vmem:[#allocation2] sm:$0x1] %vm126_vm3, %v124_v50 }
 0x183   :  { %v202_v51 = vpop.xlane.xlu0 %201 }
 0x184   :  { %v203_v52 = vmul.f32 0.1, %v202_v51 }
 0x186   :  { %v204_v55 = vsub.f32 %v198_v53, %v203_v52 }
 0x188   :  { %v209_v56 = vadd.f32 %v208_v54, %v204_v55 }
 0x18a   :  { %v211_v57 = vperm.slane %v209_v56, %v123_v47 }
 0x18c   :  { %213 = vst.msk [vmem:[#allocation2 + $0x1] sm:$0x1] %vm126_vm3, %v211_v57 }
 0x18d   :  { %224 = dma.vmem_to_hbm [thread:$0]  %s220_s5, 32, %s222_s10, [#allocation3]  }
 0x18e   :  { %270 = dma.done.wait [#allocation3], 32  }
 0x18f   :  { %271 = vsyncadd [#allocation3], 4294967264 }
 0x190   :  { %229 = vsyncpa [#allocation3], 1 }

</bundles_post_ra>
